<compile_context>
chip_gen: v7x
topology: tpu7x:2x2x1
jax: 0.10.0
libtpu: 0.0.40
codegen_flags: <defaults>
</compile_context>

<pallas_src>
import math
from functools import partial

import jax
import jax.numpy as jnp
from jax.experimental import pallas as pl
from jax.experimental.pallas import tpu as pltpu


# ----------------------------------------------------------------------------- kernel
def _fsp_kernel(ffm_ref, kt_ref, cst_ref, o_ref, *, H, W):
    """One batch-block of rows = NB*C channel planes, lane-dense (plane -> H*W lanes).

    ffm_ref : (rows, h_in*w_in)  raw (small) ffm planes for this batch block
    kt_ref  : (h_in*w_in, H*W)   Kronecker bilinear-interpolation matrix (resident)
    cst_ref : (9, rows, H*W)     resident constants:
              [0] w1_left*maskL  [1] w1_center  [2] w1_right*maskR  [3] bias1
              [4] w2_top *maskT  [5] w2_center  [6] w2_bot  *maskB  [7] bias2
              [8] learned prompt weight
    o_ref   : (rows, H*W)
    """
    HW = H * W

    # --- fused F.interpolate(mode='bilinear', align_corners=False): one MXU matmul ----
    x = jnp.dot(ffm_ref[...], kt_ref[...],
                preferred_element_type=jnp.float32,
                precision=jax.lax.Precision.HIGHEST)

    # --- depthwise Conv2d(dim, dim, (1,3), padding=(0,1), groups=dim) -----------------
    # neighbors at flat +/-1 via XLU lane rolls; boundary zeroing is pre-folded into the
    # tap planes (cst[0], cst[2]) -> no mask multiplies, no sublane broadcasts.
    y1 = (cst_ref[0] * pltpu.roll(x, shift=1, axis=1)
          + cst_ref[1] * x
          + cst_ref[2] * pltpu.roll(x, shift=HW - 1, axis=1)
          + cst_ref[3])

    # --- depthwise Conv2d(dim, dim, (3,1), padding=(1,0), groups=dim) -----------------
    y2 = (cst_ref[4] * pltpu.roll(y1, shift=W, axis=1)
          + cst_ref[5] * y1
          + cst_ref[6] * pltpu.roll(y1, shift=HW - W, axis=1)
          + cst_ref[7])

    # --- exact GELU (torch.nn.GELU default: erf form, kept for parity) -----------------
    y_att = 0.5 * y2 * (1.0 + jax.lax.erf(y2 * (1.0 / math.sqrt(2.0))))

    # --- y = (GELU(body(x)) * x) * prompt_weight ---------------------------------------
    o_ref[...] = (y_att * x) * cst_ref[8]


# ----------------------------------------------------------------------------- glue
def _interp_matrix(out_size, in_size):
    """1-D interpolation matrix matching F.interpolate(mode='bilinear', align_corners=False)."""
    scale = in_size / out_size
    i = jnp.arange(out_size, dtype=jnp.float32)
    src = jnp.maximum((i + 0.5) * scale - 0.5, 0.0)
    i0 = jnp.floor(src).astype(jnp.int32)
    lam = src - i0.astype(jnp.float32)
    i0 = jnp.minimum(i0, in_size - 1)
    i1 = jnp.minimum(i0 + 1, in_size - 1)
    m0 = jax.nn.one_hot(i0, in_size, dtype=jnp.float32) * (1.0 - lam)[:, None]
    m1 = jax.nn.one_hot(i1, in_size, dtype=jnp.float32) * lam[:, None]
    return m0 + m1                                     # (out_size, in_size)


def _pick_batch_block(N, C, hw_in, HW, vmem_budget_bytes=8 << 20):
    """Largest batch-block NB (divisor of N) whose per-step working set fits a modest
    VMEM budget.  Blocked row dims must be a multiple of 8 sublanes (or cover all rows).
    Conservative budget keeps headroom on v7x (64 MiB physical / 32 MiB default scoped)."""
    best = None
    for nb in range(1, N + 1):
        if N % nb:
            continue
        rows = nb * C
        if nb != N and rows % 8 != 0:
            continue
        step_bytes = 4 * (2 * rows * hw_in             # double-buffered input blocks
                          + 2 * rows * HW              # double-buffered output blocks
                          + (9 * rows + hw_in) * HW    # resident constants + interp matrix
                          + 6 * rows * HW)             # in-kernel f32 temporaries
        if step_bytes <= vmem_budget_bytes:
            best = nb
    return best if best is not None else (1 if C % 8 == 0 else N)


@partial(jax.jit, static_argnames=("H", "W"))
def fsp_forward(ffm, weight, w1, b1, w2, b2, H, W):
    """Pallas-backed forward of frequenctSpecificPromptGenetator (flag_highF=True)."""
    N, C, h_in, w_in = ffm.shape
    HW = H * W
    hw_in = h_in * w_in
    assert weight.shape[0] == 1, "prompt weight is defined with a leading batch dim of 1"

    # --- Kronecker bilinear-interpolation matrix (resize is fused into the kernel) ----
    R = _interp_matrix(H, h_in)                        # (H, h_in)
    Cw = _interp_matrix(W, w_in)                       # (W, w_in)
    Kt = jnp.kron(R, Cw).T                             # (hw_in, HW); x_flat @ Kt = resized

    # --- collapse N into the sublane axis ----------------------------------------------
    NB = _pick_batch_block(N, C, hw_in, HW)
    rows = NB * C
    num_blocks = N // NB

    ffm_flat = ffm.astype(jnp.float32).reshape(N * C, hw_in)

    # --- resident constants: taps folded with boundary masks, biases, prompt weight ----
    flat = jnp.arange(HW)
    col, row = flat % W, flat // W
    mask_l = (col != 0).astype(jnp.float32)[None, :]
    mask_r = (col != W - 1).astype(jnp.float32)[None, :]
    mask_t = (row != 0).astype(jnp.float32)[None, :]
    mask_b = (row != H - 1).astype(jnp.float32)[None, :]
    ones = jnp.ones((1, HW), jnp.float32)
    w1f, w2f = w1.astype(jnp.float32), w2.astype(jnp.float32)
    b1f, b2f = b1.astype(jnp.float32), b2.astype(jnp.float32)
    plane = lambda v: v[:, None] * ones                # (C,) -> (C, HW)
    cst = jnp.stack([
        w1f[:, 0, None] * mask_l,                      # left tap   * left-boundary mask
        plane(w1f[:, 1]),                              # center tap (1,3)
        w1f[:, 2, None] * mask_r,                      # right tap  * right-boundary mask
        plane(b1f),                                    # bias (1,3)
        w2f[:, 0, None] * mask_t,                      # top tap    * top-boundary mask
        plane(w2f[:, 1]),                              # center tap (3,1)
        w2f[:, 2, None] * mask_b,                      # bottom tap * bottom-boundary mask
        plane(b2f),                                    # bias (3,1)
        weight.astype(jnp.float32).reshape(C, HW),     # learned prompt weight
    ])                                                 # (9, C, HW)
    cst = jnp.tile(cst, (1, NB, 1))                    # (9, rows, HW)

    grid_spec = pltpu.PrefetchScalarGridSpec(
        num_scalar_prefetch=0,
        grid=(num_blocks,),
        in_specs=[
            pl.BlockSpec((rows, hw_in), lambda n: (n, 0)),      # small ffm batch block
            pl.BlockSpec((hw_in, HW), lambda n: (0, 0)),        # interp matrix (resident)
            pl.BlockSpec((9, rows, HW), lambda n: (0, 0, 0)),   # folded constants (resident)
        ],
        out_specs=pl.BlockSpec((rows, HW), lambda n: (n, 0)),
    )

    # Single fused step at small N -> no megacore sharding; only shard across the two
    # v7x TensorCores when there are multiple batch blocks to hand out.
    semantics = ("arbitrary",) if num_blocks == 1 else ("parallel",)

    out = pl.pallas_call(
        partial(_fsp_kernel, H=H, W=W),
        out_shape=jax.ShapeDtypeStruct((N * C, HW), jnp.float32),
        grid_spec=grid_spec,
        compiler_params=pltpu.CompilerParams(dimension_semantics=semantics),
    )(ffm_flat, Kt, cst)

    return out.reshape(N, C, H, W)


# ----------------------------------------------------------------------------- reference
def bilinear_resize_nchw(x, H, W):
    """Gather-based F.interpolate(mode='bilinear', align_corners=False) on NCHW float32."""
    x = x.astype(jnp.float32)
    _, _, h_in, w_in = x.shape

    def src_index(out_size, in_size):
        scale = in_size / out_size
        i = jnp.arange(out_size, dtype=jnp.float32)
        src = jnp.maximum((i + 0.5) * scale - 0.5, 0.0)
        i0 = jnp.floor(src).astype(jnp.int32)
        lam = src - i0.astype(jnp.float32)
        i0 = jnp.minimum(i0, in_size - 1)
        i1 = jnp.minimum(i0 + 1, in_size - 1)
        return i0, i1, lam

    r0, r1, rl = src_index(H, h_in)
    c0, c1, cl = src_index(W, w_in)
    top = x[:, :, r0, :]
    bot = x[:, :, r1, :]
    rows = top * (1.0 - rl)[None, None, :, None] + bot * rl[None, None, :, None]
    left = rows[:, :, :, c0]
    right = rows[:, :, :, c1]
    return left * (1.0 - cl)[None, None, None, :] + right * cl[None, None, None, :]


def fsp_reference(ffm, weight, w1, b1, w2, b2, H, W):
    x = bilinear_resize_nchw(ffm, H, W)
    xm1 = jnp.pad(x, ((0, 0), (0, 0), (0, 0), (1, 0)))[..., :-1]
    xp1 = jnp.pad(x, ((0, 0), (0, 0), (0, 0), (0, 1)))[..., 1:]
    cb = lambda v: v[None, :, None, None]
    y1 = cb(w1[:, 0]) * xm1 + cb(w1[:, 1]) * x + cb(w1[:, 2]) * xp1 + cb(b1)
    ym1 = jnp.pad(y1, ((0, 0), (0, 0), (1, 0), (0, 0)))[:, :, :-1, :]
    yp1 = jnp.pad(y1, ((0, 0), (0, 0), (0, 1), (0, 0)))[:, :, 1:, :]
    y2 = cb(w2[:, 0]) * ym1 + cb(w2[:, 1]) * y1 + cb(w2[:, 2]) * yp1 + cb(b2)
    y_att = 0.5 * y2 * (1.0 + jax.lax.erf(y2 / jnp.sqrt(2.0)))
    return (y_att * x) * weight


# ----------------------------------------------------------------------------- main
if __name__ == "__main__":
    # Module config (small, consistent with __init__): dim=4, h=16, w=9 -> W=(9-1)*2=16
    dim, h_param, w_param = 4, 16, 9
    H = h_param
    W = (w_param - 1) * 2                      # 16

    key = jax.random.PRNGKey(0)
    k_w, k_c1, k_b1, k_c2, k_b2, k_x = jax.random.split(key, 6)

    # nn.Parameter(torch.randn(1, dim, h, w) * 0.02)
    weight = jax.random.normal(k_w, (1, dim, H, W), jnp.float32) * 0.02
    # depthwise Conv2d(dim, dim, (1,3), groups=dim): weight (dim,1,1,3) stored as (dim,3)
    conv1_w = jax.random.normal(k_c1, (dim, 3), jnp.float32) * 0.3
    conv1_b = jax.random.normal(k_b1, (dim,), jnp.float32) * 0.1
    # depthwise Conv2d(dim, dim, (3,1), groups=dim): weight (dim,1,3,1) stored as (dim,3)
    conv2_w = jax.random.normal(k_c2, (dim, 3), jnp.float32) * 0.3
    conv2_b = jax.random.normal(k_b2, (dim,), jnp.float32) * 0.1

    # input feature map (NCHW), smaller spatial size so the bilinear upsample is exercised
    ffm = jax.random.normal(k_x, (2, dim, 8, 8), jnp.float32)

    out = fsp_forward(ffm, weight, conv1_w, conv1_b, conv2_w, conv2_b, H=H, W=W)
    out = jax.block_until_ready(out)

    ref = fsp_reference(ffm, weight, conv1_w, conv1_b, conv2_w, conv2_b, H, W)
    assert out.shape == (2, dim, H, W) and out.dtype == jnp.float32
    max_err = float(jnp.max(jnp.abs(out - ref)))
    assert max_err < 5e-4, f"Pallas kernel mismatch vs reference (max abs err {max_err})"

    print("KERNEL_OK")
</pallas_src>

<mosaic_0001>
module attributes {stable_mosaic.version = 11 : i64} {
  func.func @_fsp_kernel(%arg0: i32, %arg1: memref<8x64xf32, #tpu.memory_space<vmem>>, %arg2: memref<64x256xf32, #tpu.memory_space<vmem>>, %arg3: memref<9x8x256xf32, #tpu.memory_space<vmem>>, %arg4: memref<8x256xf32, #tpu.memory_space<vmem>>) attributes {dimension_semantics = [#tpu.dimension_semantics<arbitrary>], iteration_bounds = array<i64: 1>, scalar_prefetch = 0 : i64, scratch_operands = 0 : i64, tpu.core_type = #tpu.core_type<tc>, window_params = [{transform_indices = @transform_0, window_bounds = array<i64: 8, 64>}, {pipeline_mode = #tpu.pipeline_mode<synchronous>, transform_indices = @transform_1, window_bounds = array<i64: 64, 256>}, {pipeline_mode = #tpu.pipeline_mode<synchronous>, transform_indices = @transform_2, window_bounds = array<i64: 9, 8, 256>}, {transform_indices = @transform_3, window_bounds = array<i64: 8, 256>}]} {
    %c0 = arith.constant 0 : index
    %c0_0 = arith.constant 0 : index
    %0 = vector.load %arg1[%c0, %c0_0] : memref<8x64xf32, #tpu.memory_space<vmem>>, vector<8x64xf32>
    %c0_1 = arith.constant 0 : index
    %c0_2 = arith.constant 0 : index
    %1 = vector.load %arg2[%c0_1, %c0_2] : memref<64x256xf32, #tpu.memory_space<vmem>>, vector<64x256xf32>
    %cst = arith.constant dense<0.000000e+00> : vector<8x256xf32>
    %2 = tpu.matmul %0, %1, %cst {dimension_numbers = #tpu.dot_dimension_numbers<[1], [0], [0], [1], [0, 0, 1, 1], [], []>, precision = #tpu.contract_precision<fp32>} : vector<8x64xf32>, vector<64x256xf32>, vector<8x256xf32> -> vector<8x256xf32>
    %c0_3 = arith.constant 0 : index
    %c0_4 = arith.constant 0 : index
    %c0_5 = arith.constant 0 : index
    %3 = vector.load %arg3[%c0_3, %c0_4, %c0_5] : memref<9x8x256xf32, #tpu.memory_space<vmem>>, vector<1x8x256xf32>
    %4 = vector.shape_cast %3 : vector<1x8x256xf32> to vector<8x256xf32>
    %c1_i32 = arith.constant 1 : i32
    %5 = tpu.dynamic_rotate %2 by %c1_i32 dim 1 : vector<8x256xf32>, i32 -> vector<8x256xf32>
    %6 = arith.mulf %4, %5 : vector<8x256xf32>
    %c1 = arith.constant 1 : index
    %c0_6 = arith.constant 0 : index
    %c0_7 = arith.constant 0 : index
    %7 = vector.load %arg3[%c1, %c0_6, %c0_7] : memref<9x8x256xf32, #tpu.memory_space<vmem>>, vector<1x8x256xf32>
    %8 = vector.shape_cast %7 : vector<1x8x256xf32> to vector<8x256xf32>
    %9 = arith.mulf %8, %2 : vector<8x256xf32>
    %10 = arith.addf %6, %9 : vector<8x256xf32>
    %c2 = arith.constant 2 : index
    %c0_8 = arith.constant 0 : index
    %c0_9 = arith.constant 0 : index
    %11 = vector.load %arg3[%c2, %c0_8, %c0_9] : memref<9x8x256xf32, #tpu.memory_space<vmem>>, vector<1x8x256xf32>
    %12 = vector.shape_cast %11 : vector<1x8x256xf32> to vector<8x256xf32>
    %c255_i32 = arith.constant 255 : i32
    %13 = tpu.dynamic_rotate %2 by %c255_i32 dim 1 : vector<8x256xf32>, i32 -> vector<8x256xf32>
    %14 = arith.mulf %12, %13 : vector<8x256xf32>
    %15 = arith.addf %10, %14 : vector<8x256xf32>
    %c3 = arith.constant 3 : index
    %c0_10 = arith.constant 0 : index
    %c0_11 = arith.constant 0 : index
    %16 = vector.load %arg3[%c3, %c0_10, %c0_11] : memref<9x8x256xf32, #tpu.memory_space<vmem>>, vector<1x8x256xf32>
    %17 = vector.shape_cast %16 : vector<1x8x256xf32> to vector<8x256xf32>
    %18 = arith.addf %15, %17 : vector<8x256xf32>
    %c4 = arith.constant 4 : index
    %c0_12 = arith.constant 0 : index
    %c0_13 = arith.constant 0 : index
    %19 = vector.load %arg3[%c4, %c0_12, %c0_13] : memref<9x8x256xf32, #tpu.memory_space<vmem>>, vector<1x8x256xf32>
    %20 = vector.shape_cast %19 : vector<1x8x256xf32> to vector<8x256xf32>
    %c16_i32 = arith.constant 16 : i32
    %21 = tpu.dynamic_rotate %18 by %c16_i32 dim 1 : vector<8x256xf32>, i32 -> vector<8x256xf32>
    %22 = arith.mulf %20, %21 : vector<8x256xf32>
    %c5 = arith.constant 5 : index
    %c0_14 = arith.constant 0 : index
    %c0_15 = arith.constant 0 : index
    %23 = vector.load %arg3[%c5, %c0_14, %c0_15] : memref<9x8x256xf32, #tpu.memory_space<vmem>>, vector<1x8x256xf32>
    %24 = vector.shape_cast %23 : vector<1x8x256xf32> to vector<8x256xf32>
    %25 = arith.mulf %24, %18 : vector<8x256xf32>
    %26 = arith.addf %22, %25 : vector<8x256xf32>
    %c6 = arith.constant 6 : index
    %c0_16 = arith.constant 0 : index
    %c0_17 = arith.constant 0 : index
    %27 = vector.load %arg3[%c6, %c0_16, %c0_17] : memref<9x8x256xf32, #tpu.memory_space<vmem>>, vector<1x8x256xf32>
    %28 = vector.shape_cast %27 : vector<1x8x256xf32> to vector<8x256xf32>
    %c240_i32 = arith.constant 240 : i32
    %29 = tpu.dynamic_rotate %18 by %c240_i32 dim 1 : vector<8x256xf32>, i32 -> vector<8x256xf32>
    %30 = arith.mulf %28, %29 : vector<8x256xf32>
    %31 = arith.addf %26, %30 : vector<8x256xf32>
    %c7 = arith.constant 7 : index
    %c0_18 = arith.constant 0 : index
    %c0_19 = arith.constant 0 : index
    %32 = vector.load %arg3[%c7, %c0_18, %c0_19] : memref<9x8x256xf32, #tpu.memory_space<vmem>>, vector<1x8x256xf32>
    %33 = vector.shape_cast %32 : vector<1x8x256xf32> to vector<8x256xf32>
    %34 = arith.addf %31, %33 : vector<8x256xf32>
    %cst_20 = arith.constant 5.000000e-01 : f32
    %35 = vector.broadcast %cst_20 : f32 to vector<8x256xf32>
    %36 = arith.mulf %35, %34 : vector<8x256xf32>
    %cst_21 = arith.constant 0.707106769 : f32
    %37 = vector.broadcast %cst_21 : f32 to vector<8x256xf32>
    %38 = arith.mulf %34, %37 : vector<8x256xf32>
    %39 = math.erf %38 : vector<8x256xf32>
    %cst_22 = arith.constant 1.000000e+00 : f32
    %40 = vector.broadcast %cst_22 : f32 to vector<8x256xf32>
    %41 = arith.addf %40, %39 : vector<8x256xf32>
    %42 = arith.mulf %36, %41 : vector<8x256xf32>
    %43 = arith.mulf %42, %2 : vector<8x256xf32>
    %c8 = arith.constant 8 : index
    %c0_23 = arith.constant 0 : index
    %c0_24 = arith.constant 0 : index
    %44 = vector.load %arg3[%c8, %c0_23, %c0_24] : memref<9x8x256xf32, #tpu.memory_space<vmem>>, vector<1x8x256xf32>
    %45 = vector.shape_cast %44 : vector<1x8x256xf32> to vector<8x256xf32>
    %46 = arith.mulf %43, %45 : vector<8x256xf32>
    %c0_25 = arith.constant 0 : index
    %c0_26 = arith.constant 0 : index
    %47 = vector.load %arg4[%c0_25, %c0_26] : memref<8x256xf32, #tpu.memory_space<vmem>>, vector<8x256xf32>
    tpu.vector_store %arg4[%c0_25, %c0_26], %46 {strides = array<i32>} : memref<8x256xf32, #tpu.memory_space<vmem>>, vector<8x256xf32>,
    return
  }
  func.func @transform_0(%arg0: i32) -> (i32, i32) {
    %c0_i32 = arith.constant 0 : i32
    %c0_i32_0 = arith.constant 0 : i32
    return %arg0, %c0_i32 : i32, i32
  }
  func.func @transform_1(%arg0: i32) -> (i32, i32) {
    %c0_i32 = arith.constant 0 : i32
    %c0_i32_0 = arith.constant 0 : i32
    %c0_i32_1 = arith.constant 0 : i32
    return %c0_i32, %c0_i32_0 : i32, i32
  }
  func.func @transform_2(%arg0: i32) -> (i32, i32, i32) {
    %c0_i32 = arith.constant 0 : i32
    %c0_i32_0 = arith.constant 0 : i32
    %c0_i32_1 = arith.constant 0 : i32
    %c0_i32_2 = arith.constant 0 : i32
    return %c0_i32, %c0_i32_0, %c0_i32_1 : i32, i32, i32
  }
  func.func @transform_3(%arg0: i32) -> (i32, i32) {
    %c0_i32 = arith.constant 0 : i32
    %c0_i32_0 = arith.constant 0 : i32
    return %arg0, %c0_i32 : i32, i32
  }
}

</mosaic_0001>

<bundles_post_ra>
// kernel: tile.9
= control target key start
LH: loop header
LB: loop body
LE: loop exit
PB: predicated region body
PF: predicated region fallthrough
CT: control target
= control target key end

     0   :  { %s652_s0 = inlined_call_operand.vmem [shape: f32[9,2,4,256], index: 0, kind: input, shape index: {}]   ;;  %s653_s1 = inlined_call_operand.vmem [shape: f32[9,8,256], index: 1, kind: output, shape index: {}]  }
   0x1   :  { %v356_v0 = vld [vmem:[%s652_s0 + $0x8c] sm:$0xf]  ;;  %v357_v1 = vld [vmem:[%s652_s0 + $0x88] sm:$0xf]  ;;  %v358_v2 = vld [vmem:[%s652_s0 + $0x84] sm:$0xf] }
   0x2   :  { %8 = vst [vmem:[#allocation0 + $0x118] sm:$0xf] %v356_v0  ;;  %13 = vst [vmem:[#allocation0 + $0x110] sm:$0xf] %v357_v1  ;;  %v359_v3 = vld [vmem:[%s652_s0 + $0x80] sm:$0xf] }
   0x3   :  { %18 = vst [vmem:[#allocation0 + $0x108] sm:$0xf] %v358_v2  ;;  %v360_v4 = vld [vmem:[%s652_s0 + $0x7c] sm:$0xf]  ;;  %v361_v5 = vld [vmem:[%s652_s0 + $0x78] sm:$0xf] }
   0x4   :  { %23 = vst [vmem:[#allocation0 + $0x100] sm:$0xf] %v359_v3  ;;  %28 = vst [vmem:[#allocation0 + $0xf8] sm:$0xf] %v360_v4  ;;  %v362_v6 = vld [vmem:[%s652_s0 + $0x74] sm:$0xf] }
   0x5   :  { %33 = vst [vmem:[#allocation0 + $0xf0] sm:$0xf] %v361_v5  ;;  %v363_v7 = vld [vmem:[%s652_s0 + $0x70] sm:$0xf]  ;;  %v364_v8 = vld [vmem:[%s652_s0 + $0x6c] sm:$0xf] }
   0x6   :  { %38 = vst [vmem:[#allocation0 + $0xe8] sm:$0xf] %v362_v6  ;;  %43 = vst [vmem:[#allocation0 + $0xe0] sm:$0xf] %v363_v7  ;;  %v365_v9 = vld [vmem:[%s652_s0 + $0x68] sm:$0xf] }
   0x7   :  { %48 = vst [vmem:[#allocation0 + $0xd8] sm:$0xf] %v364_v8  ;;  %v366_v10 = vld [vmem:[%s652_s0 + $0x64] sm:$0xf]  ;;  %v367_v11 = vld [vmem:[%s652_s0 + $0x60] sm:$0xf] }
   0x8   :  { %53 = vst [vmem:[#allocation0 + $0xd0] sm:$0xf] %v365_v9  ;;  %58 = vst [vmem:[#allocation0 + $0xc8] sm:$0xf] %v366_v10  ;;  %v368_v12 = vld [vmem:[%s652_s0 + $0x5c] sm:$0xf] }
   0x9   :  { %63 = vst [vmem:[#allocation0 + $0xc0] sm:$0xf] %v367_v11  ;;  %v369_v13 = vld [vmem:[%s652_s0 + $0x58] sm:$0xf]  ;;  %v370_v14 = vld [vmem:[%s652_s0 + $0x54] sm:$0xf] }
   0xa   :  { %68 = vst [vmem:[#allocation0 + $0xb8] sm:$0xf] %v368_v12  ;;  %73 = vst [vmem:[#allocation0 + $0xb0] sm:$0xf] %v369_v13  ;;  %v371_v15 = vld [vmem:[%s652_s0 + $0x50] sm:$0xf] }
   0xb   :  { %78 = vst [vmem:[#allocation0 + $0xa8] sm:$0xf] %v370_v14  ;;  %v372_v16 = vld [vmem:[%s652_s0 + $0x4c] sm:$0xf]  ;;  %v373_v17 = vld [vmem:[%s652_s0 + $0x48] sm:$0xf] }
   0xc   :  { %83 = vst [vmem:[#allocation0 + $0xa0] sm:$0xf] %v371_v15  ;;  %88 = vst [vmem:[#allocation0 + $0x98] sm:$0xf] %v372_v16  ;;  %v374_v18 = vld [vmem:[%s652_s0 + $0x44] sm:$0xf] }
   0xd   :  { %93 = vst [vmem:[#allocation0 + $0x90] sm:$0xf] %v373_v17  ;;  %v375_v19 = vld [vmem:[%s652_s0 + $0x40] sm:$0xf]  ;;  %v376_v20 = vld [vmem:[%s652_s0 + $0x3c] sm:$0xf] }
   0xe   :  { %98 = vst [vmem:[#allocation0 + $0x88] sm:$0xf] %v374_v18  ;;  %103 = vst [vmem:[#allocation0 + $0x80] sm:$0xf] %v375_v19  ;;  %v377_v21 = vld [vmem:[%s652_s0 + $0x38] sm:$0xf] }
   0xf   :  { %108 = vst [vmem:[#allocation0 + $0x78] sm:$0xf] %v376_v20  ;;  %v378_v22 = vld [vmem:[%s652_s0 + $0x34] sm:$0xf]  ;;  %v379_v23 = vld [vmem:[%s652_s0 + $0x30] sm:$0xf] }
  0x10   :  { %113 = vst [vmem:[#allocation0 + $0x70] sm:$0xf] %v377_v21  ;;  %118 = vst [vmem:[#allocation0 + $0x68] sm:$0xf] %v378_v22  ;;  %v380_v24 = vld [vmem:[%s652_s0 + $0x2c] sm:$0xf] }
  0x11   :  { %123 = vst [vmem:[#allocation0 + $0x60] sm:$0xf] %v379_v23  ;;  %v381_v25 = vld [vmem:[%s652_s0 + $0x28] sm:$0xf]  ;;  %v382_v26 = vld [vmem:[%s652_s0 + $0x24] sm:$0xf] }
  0x12   :  { %128 = vst [vmem:[#allocation0 + $0x58] sm:$0xf] %v380_v24  ;;  %133 = vst [vmem:[#allocation0 + $0x50] sm:$0xf] %v381_v25  ;;  %v383_v27 = vld [vmem:[%s652_s0 + $0x20] sm:$0xf] }
  0x13   :  { %138 = vst [vmem:[#allocation0 + $0x48] sm:$0xf] %v382_v26  ;;  %v384_v28 = vld [vmem:[%s652_s0 + $0x1c] sm:$0xf]  ;;  %v385_v29 = vld [vmem:[%s652_s0 + $0x18] sm:$0xf] }
  0x14   :  { %143 = vst [vmem:[#allocation0 + $0x40] sm:$0xf] %v383_v27  ;;  %148 = vst [vmem:[#allocation0 + $0x38] sm:$0xf] %v384_v28  ;;  %v386_v30 = vld [vmem:[%s652_s0 + $0x14] sm:$0xf] }
  0x15   :  { %153 = vst [vmem:[#allocation0 + $0x30] sm:$0xf] %v385_v29  ;;  %v387_v31 = vld [vmem:[%s652_s0 + $0x10] sm:$0xf]  ;;  %v388_v32 = vld [vmem:[%s652_s0 + $0xc] sm:$0xf] }
  0x16   :  { %158 = vst [vmem:[#allocation0 + $0x28] sm:$0xf] %v386_v30  ;;  %163 = vst [vmem:[#allocation0 + $0x20] sm:$0xf] %v387_v31  ;;  %v389_v33 = vld [vmem:[%s652_s0 + $0x8] sm:$0xf] }
  0x17   :  { %168 = vst [vmem:[#allocation0 + $0x18] sm:$0xf] %v388_v32  ;;  %v390_v34 = vld [vmem:[%s652_s0 + $0x4] sm:$0xf]  ;;  %v178_v35 = vld [vmem:[%s652_s0] sm:$0xf] }
  0x18   :  { %173 = vst [vmem:[#allocation0 + $0x10] sm:$0xf] %v389_v33  ;;  %177 = vst [vmem:[#allocation0 + $0x8] sm:$0xf] %v390_v34  ;;  %v263_v36 = vld [vmem:[#allocation0 + $0xa8] sm:$0xf]  }
  0x19   :  { %179 = vst [vmem:[#allocation0] sm:$0xf] %v178_v35  ;;  %v267_v37 = vld [vmem:[#allocation0 + $0xb0] sm:$0xf]   ;;  %v271_v38 = vld [vmem:[#allocation0 + $0xb8] sm:$0xf]  }
  0x1a   :  { %v251_v39 = vld [vmem:[#allocation0 + $0x90] sm:$0xf]   ;;  %v255_v40 = vld [vmem:[#allocation0 + $0x98] sm:$0xf]   ;;  %v259_v41 = vld [vmem:[#allocation0 + $0xa0] sm:$0xf]  }
  0x1b   :  { %411 = vst [vmem:[%s653_s1 + $0x58] sm:$0xf] %v263_v36   ;;  %412 = vst [vmem:[%s653_s1 + $0x54] sm:$0xf] %v267_v37   ;;  %v239_v42 = vld [vmem:[#allocation0 + $0x78] sm:$0xf]  }
  0x1c   :  { %413 = vst [vmem:[%s653_s1 + $0x5c] sm:$0xf] %v271_v38   ;;  %v243_v43 = vld [vmem:[#allocation0 + $0x80] sm:$0xf]   ;;  %v247_v44 = vld [vmem:[#allocation0 + $0x88] sm:$0xf]  }
  0x1d   :  { %408 = vst [vmem:[%s653_s1 + $0x44] sm:$0xf] %v251_v39   ;;  %409 = vst [vmem:[%s653_s1 + $0x4c] sm:$0xf] %v255_v40   ;;  %v227_v45 = vld [vmem:[#allocation0 + $0x60] sm:$0xf]  }
  0x1e   :  { %410 = vst [vmem:[%s653_s1 + $0x50] sm:$0xf] %v259_v41   ;;  %v231_v46 = vld [vmem:[#allocation0 + $0x68] sm:$0xf]   ;;  %v235_v47 = vld [vmem:[#allocation0 + $0x70] sm:$0xf]  }
  0x1f   :  { %405 = vst [vmem:[%s653_s1 + $0x3c] sm:$0xf] %v239_v42   ;;  %406 = vst [vmem:[%s653_s1 + $0x40] sm:$0xf] %v243_v43   ;;  %v215_v48 = vld [vmem:[#allocation0 + $0x48] sm:$0xf]  }
  0x20   :  { %407 = vst [vmem:[%s653_s1 + $0x48] sm:$0xf] %v247_v44   ;;  %v219_v49 = vld [vmem:[#allocation0 + $0x50] sm:$0xf]   ;;  %v223_v50 = vld [vmem:[#allocation0 + $0x58] sm:$0xf]  }
  0x21   :  { %402 = vst [vmem:[%s653_s1 + $0x30] sm:$0xf] %v227_v45   ;;  %403 = vst [vmem:[%s653_s1 + $0x38] sm:$0xf] %v231_v46   ;;  %v203_v51 = vld [vmem:[#allocation0 + $0x30] sm:$0xf]  }
  0x22   :  { %404 = vst [vmem:[%s653_s1 + $0x34] sm:$0xf] %v235_v47   ;;  %v207_v52 = vld [vmem:[#allocation0 + $0x38] sm:$0xf]   ;;  %v211_v53 = vld [vmem:[#allocation0 + $0x40] sm:$0xf]  }
  0x23   :  { %399 = vst [vmem:[%s653_s1 + $0x28] sm:$0xf] %v215_v48   ;;  %400 = vst [vmem:[%s653_s1 + $0x24] sm:$0xf] %v219_v49   ;;  %v191_v54 = vld [vmem:[#allocation0 + $0x18] sm:$0xf]  }
  0x24   :  { %401 = vst [vmem:[%s653_s1 + $0x2c] sm:$0xf] %v223_v50   ;;  %v195_v55 = vld [vmem:[#allocation0 + $0x20] sm:$0xf]   ;;  %v199_v56 = vld [vmem:[#allocation0 + $0x28] sm:$0xf]  }
  0x25   :  { %396 = vst [vmem:[%s653_s1 + $0x14] sm:$0xf] %v203_v51   ;;  %397 = vst [vmem:[%s653_s1 + $0x1c] sm:$0xf] %v207_v52   ;;  %v180_v57 = vld [vmem:[#allocation0] sm:$0xf]  }
  0x26   :  { %398 = vst [vmem:[%s653_s1 + $0x20] sm:$0xf] %v211_v53   ;;  %v183_v58 = vld [vmem:[#allocation0 + $0x8] sm:$0xf]   ;;  %v187_v59 = vld [vmem:[#allocation0 + $0x10] sm:$0xf]  }
  0x27   :  { %393 = vst [vmem:[%s653_s1 + $0xc] sm:$0xf] %v191_v54   ;;  %394 = vst [vmem:[%s653_s1 + $0x10] sm:$0xf] %v195_v55   ;;  %v275_v60 = vld [vmem:[#allocation0 + $0xc0] sm:$0xf]  }
  0x28   :  { %395 = vst [vmem:[%s653_s1 + $0x18] sm:$0xf] %v199_v56   ;;  %181 = vst [vmem:[%s653_s1] sm:$0xf] %v180_v57   ;;  %v279_v61 = vld [vmem:[#allocation0 + $0xc8] sm:$0xf]  }
  0x29   :  { %391 = vst [vmem:[%s653_s1 + $0x8] sm:$0xf] %v183_v58   ;;  %392 = vst [vmem:[%s653_s1 + $0x4] sm:$0xf] %v187_v59   ;;  %v283_v62 = vld [vmem:[#allocation0 + $0xd0] sm:$0xf]  }
  0x2a   :  { %414 = vst [vmem:[%s653_s1 + $0x60] sm:$0xf] %v275_v60   ;;  %415 = vst [vmem:[%s653_s1 + $0x68] sm:$0xf] %v279_v61   ;;  %v287_v63 = vld [vmem:[#allocation0 + $0xd8] sm:$0xf]  }
  0x2b   :  { %416 = vst [vmem:[%s653_s1 + $0x64] sm:$0xf] %v283_v62   ;;  %v291_v0 = vld [vmem:[#allocation0 + $0xe0] sm:$0xf]   ;;  %v295_v1 = vld [vmem:[#allocation0 + $0xe8] sm:$0xf]  }
  0x2c   :  { %417 = vst [vmem:[%s653_s1 + $0x6c] sm:$0xf] %v287_v63   ;;  %418 = vst [vmem:[%s653_s1 + $0x70] sm:$0xf] %v291_v0   ;;  %v299_v2 = vld [vmem:[#allocation0 + $0xf0] sm:$0xf]  }
  0x2d   :  { %419 = vst [vmem:[%s653_s1 + $0x78] sm:$0xf] %v295_v1   ;;  %v303_v3 = vld [vmem:[#allocation0 + $0xf8] sm:$0xf]   ;;  %v307_v4 = vld [vmem:[#allocation0 + $0x100] sm:$0xf]  }
  0x2e   :  { %420 = vst [vmem:[%s653_s1 + $0x74] sm:$0xf] %v299_v2   ;;  %421 = vst [vmem:[%s653_s1 + $0x7c] sm:$0xf] %v303_v3   ;;  %v311_v5 = vld [vmem:[#allocation0 + $0x108] sm:$0xf]  }
  0x2f   :  { %422 = vst [vmem:[%s653_s1 + $0x80] sm:$0xf] %v307_v4   ;;  %v315_v6 = vld [vmem:[#allocation0 + $0x110] sm:$0xf]   ;;  %v319_v7 = vld [vmem:[#allocation0 + $0x118] sm:$0xf]  }
  0x30   :  { %423 = vst [vmem:[%s653_s1 + $0x88] sm:$0xf] %v311_v5   ;;  %424 = vst [vmem:[%s653_s1 + $0x84] sm:$0xf] %v315_v6  }
  0x31   :  { %425 = vst [vmem:[%s653_s1 + $0x8c] sm:$0xf] %v319_v7  }

// kernel: fsp_forward.1
= control target key start
LH: loop header
LB: loop body
LE: loop exit
PB: predicated region body
PF: predicated region fallthrough
CT: control target
= control target key end

     0   :  { %v913_v3 = vmov 0.0   ;;  %vm31_vm0 = vcmask 523264   ;;  %s916_s8 = smov 16   ;;  %s917_s9 = smov 112   ;;  %s1199_s1 = inlined_call_operand.vmem [shape: f32[64,256], index: 1, kind: input, shape index: {}]   ;;  %s1200_s0 = inlined_call_operand.vmem [shape: f32[8,64], index: 0, kind: input, shape index: {}]   ;;  %s1201_s2 = inlined_call_operand.vmem [shape: f32[9,8,256], index: 2, kind: input, shape index: {}]   ;;  %s1202_s3 = inlined_call_operand.vmem [shape: f32[8,256], index: 3, kind: output, shape index: {}]  }
   0x1   :  { %v16_v0 = vld [vmem:[%s1199_s1 + $0x8] sm:$0xff]  ;;  %v18_v1 = vld [vmem:[%s1199_s1 + $0x18] sm:$0xff]  ;;  %v15_v2 = vld [vmem:[%s1199_s1] sm:$0xff]  ;;  %115 = vmatprep.mubr.f32.mxu1 %v913_v3  ;;  %464 = vmatprep.mubr.f32.mxu0 %v913_v3 }
   0x2   :  { %v35_v4 = vand.u32 4294901760, %v16_v0  ;;  %v39_v5 = vand.u32 4294901760, %v18_v1  ;;  %v17_v6 = vld [vmem:[%s1199_s1 + $0x10] sm:$0xff]  ;;  %v37_v7 = vand.u32 4294901760, %v15_v2  ;;  %v20_v8 = vld [vmem:[%s1199_s1 + $0x28] sm:$0xff]  ;;  %v22_v9 = vld [vmem:[%s1199_s1 + $0x38] sm:$0xff] }
   0x3   :  { %v41_v10 = vand.u32 4294901760, %v17_v6  ;;  %v43_v11 = vand.u32 4294901760, %v20_v8  ;;  %v47_v12 = vand.u32 4294901760, %v22_v9  ;;  %v19_v13 = vld [vmem:[%s1199_s1 + $0x20] sm:$0xff]  ;;  %v21_v14 = vld [vmem:[%s1199_s1 + $0x30] sm:$0xff]  ;;  %v24_v15 = vld [vmem:[%s1199_s1 + $0x48] sm:$0xff] }
   0x4   :  { %v967_v16 = vpack.c.bf16 %v39_v5, %v35_v4  ;;  %v969_v17 = vsub.f32 %v16_v0, %v35_v4  ;;  %v971_v18 = vsub.f32 %v18_v1, %v39_v5  ;;  %v26_v19 = vld [vmem:[%s1199_s1 + $0x58] sm:$0xff]  ;;  %v23_v20 = vld [vmem:[%s1199_s1 + $0x40] sm:$0xff]  ;;  %v25_v21 = vld [vmem:[%s1199_s1 + $0x50] sm:$0xff]  ;;  %v984_v23 = vsub.f32 %v15_v2, %v37_v7 }
   0x5   :  { %v982_v22 = vpack.c.bf16 %v41_v10, %v37_v7  ;;  %v986_v24 = vsub.f32 %v17_v6, %v41_v10  ;;  %v988_v25 = vpack.c.bf16 %v47_v12, %v43_v11  ;;  %v28_v26 = vld [vmem:[%s1199_s1 + $0x68] sm:$0xff]  ;;  %v30_v27 = vld [vmem:[%s1199_s1 + $0x78] sm:$0xff]  ;;  %v998_v28 = vsub.f32 %v20_v8, %v43_v11  ;;  %v27_v40 = vld [vmem:[%s1199_s1 + $0x60] sm:$0xff] }
   0x6   :  { %799 = vmatprep.subr.bf16.mxu1 %v967_v16  ;;  %847 = vmatprep.subr.bf16.mxu0 %v967_v16  ;;  %v45_v29 = vand.u32 4294901760, %v19_v13  ;;  %v49_v30 = vand.u32 4294901760, %v21_v14  ;;  %v51_v31 = vand.u32 4294901760, %v24_v15  ;;  %v55_v32 = vand.u32 4294901760, %v26_v19  ;;  %v29_v41 = vld [vmem:[%s1199_s1 + $0x70] sm:$0xff]  ;;  %v14_v46 = vld [vmem:[%s1200_s0] sm:$0xff] }
   0x7   :  { %801 = vmatpush1.bf16.msra.mxu1 %v982_v22  ;;  %849 = vmatpush1.bf16.msra.mxu0 %v982_v22  ;;  %v53_v33 = vand.u32 4294901760, %v23_v20  ;;  %v57_v34 = vand.u32 4294901760, %v25_v21  ;;  %v59_v35 = vand.u32 4294901760, %v28_v26  ;;  %v1003_v36 = vsub.f32 %v22_v9, %v47_v12  ;;  %s914_s0 = smov 127   ;;  %s915_s1 = smov 1  }
   0x8   :  { %803 = vmatprep.subr.bf16.mxu1 %v988_v25  ;;  %851 = vmatprep.subr.bf16.mxu0 %v988_v25  ;;  %v1006_v37 = vpack.c.bf16 %v49_v30, %v45_v29  ;;  %v1008_v38 = vsub.f32 %v19_v13, %v45_v29  ;;  %v63_v39 = vand.u32 4294901760, %v30_v27  ;;  %v1016_v42 = vsub.f32 %v21_v14, %v49_v30 }
   0x9   :  { %v1018_v43 = vpack.c.bf16 %v55_v32, %v51_v31  ;;  %v1020_v44 = vsub.f32 %v24_v15, %v51_v31  ;;  %v1022_v45 = vsub.f32 %v26_v19, %v55_v32  ;;  %v1027_v47 = vpack.c.bf16 %v57_v34, %v53_v33 }
   0xa   :  { %v1029_v48 = vsub.f32 %v23_v20, %v53_v33  ;;  %v1031_v49 = vsub.f32 %v25_v21, %v57_v34  ;;  %v1033_v50 = vpack.c.bf16 %v63_v39, %v59_v35  ;;  %v1037_v51 = vsub.f32 %v28_v26, %v59_v35 }
   0xb   :  { %805 = vmatpush1.bf16.msra.mxu1 %v1006_v37  ;;  %853 = vmatpush1.bf16.msra.mxu0 %v1006_v37  ;;  %v61_v52 = vand.u32 4294901760, %v27_v40  ;;  %v65_v53 = vand.u32 4294901760, %v29_v41  ;;  %v129_v54 = vand.u32 4294901760, %v969_v17  ;;  %v141_v55 = vand.u32 4294901760, %v971_v18 }
   0xc   :  { %807 = vmatprep.subr.bf16.mxu1 %v1018_v43  ;;  %855 = vmatprep.subr.bf16.mxu0 %v1018_v43  ;;  %v33_v56 = vsel %vm31_vm0, %v14_v46, 0  ;;  %v135_v57 = vand.u32 4294901760, %v984_v23  ;;  %v147_v58 = vand.u32 4294901760, %v986_v24  ;;  %v1046_v59 = vsub.f32 %v30_v27, %v63_v39 }
   0xd   :  { %v1048_v60 = vpack.c.bf16 %v65_v53, %v61_v52  ;;  %v1050_v61 = vsub.f32 %v27_v40, %v61_v52  ;;  %v130_v62 = vsub.f32 %v969_v17, %v129_v54  ;;  %v1053_v63 = vsub.f32 %v29_v41, %v65_v53 }
   0xe   :  { %v142_v0 = vsub.f32 %v971_v18, %v141_v55  ;;  %v1056_v1 = vand.u32 4294901760, %v33_v56  ;;  %v136_v2 = vsub.f32 %v984_v23, %v135_v57  ;;  %v862_v5 = vpack.c.bf16 %v141_v55, %v129_v54 }
   0xf   :  { %809 = vmatpush1.bf16.msra.mxu1 %v1027_v47  ;;  %857 = vmatpush1.bf16.msra.mxu0 %v1027_v47  ;;  %v131_v4 = vand.u32 4294901760, %v130_v62  ;;  %v148_v6 = vsub.f32 %v986_v24, %v147_v58  ;;  %v153_v7 = vand.u32 4294901760, %v998_v28  ;;  %v165_v11 = vand.u32 4294901760, %v1003_v36 }
  0x10   :  { %811 = vmatprep.subr.bf16.mxu1 %v1033_v50  ;;  %859 = vmatprep.subr.bf16.mxu0 %v1033_v50  ;;  %v143_v8 = vand.u32 4294901760, %v142_v0  ;;  %v1066_v9 = vsub.f32 %v33_v56, %v1056_v1  ;;  %v137_v10 = vand.u32 4294901760, %v136_v2  ;;  %v159_v14 = vand.u32 4294901760, %v1008_v38 }
  0x11   :  { %v149_v12 = vand.u32 4294901760, %v148_v6  ;;  %v154_v13 = vsub.f32 %v998_v28, %v153_v7  ;;  %v171_v15 = vand.u32 4294901760, %v1016_v42  ;;  %v864_v21 = vpack.c.bf16 %v147_v58, %v135_v57 }
  0x12   :  { %v814_v19 = vpack.c.bf16 %v143_v8, %v131_v4  ;;  %v118_v20 = vand.u32 4294901760, %v1066_v9  ;;  %v166_v26 = vsub.f32 %v1003_v36, %v165_v11  ;;  %v866_v29 = vpack.c.bf16 %v165_v11, %v153_v7 }
  0x13   :  { %813 = vmatpush1.bf16.msra.mxu1 %v1048_v60  ;;  %861 = vmatpush1.bf16.msra.mxu0 %v1048_v60  ;;  %v155_v27 = vand.u32 4294901760, %v154_v13  ;;  %v160_v30 = vsub.f32 %v1008_v38, %v159_v14  ;;  %v172_v31 = vsub.f32 %v1016_v42, %v171_v15  ;;  %v816_v33 = vpack.c.bf16 %v149_v12, %v137_v10 }
  0x14   :  { %815 = vmatprep.subr.bf16.mxu1 %v814_v19  ;;  %863 = vmatprep.subr.bf16.mxu0 %v862_v5  ;;  %v119_v32 = vsub.f32 %v1066_v9, %v118_v20  ;;  %v167_v34 = vand.u32 4294901760, %v166_v26  ;;  %v177_v35 = vand.u32 4294901760, %v1020_v44  ;;  %v189_v41 = vand.u32 4294901760, %v1022_v45 }
  0x15   :  { %v161_v39 = vand.u32 4294901760, %v160_v30  ;;  %v173_v40 = vand.u32 4294901760, %v172_v31  ;;  %v183_v46 = vand.u32 4294901760, %v1029_v48  ;;  %v195_v55 = vand.u32 4294901760, %v1031_v49 }
  0x16   :  { %v120_v52 = vand.u32 4294901760, %v119_v32  ;;  %468 = vmatmul.mubr.f32.vlgmr.msra.gmra.mrb[0].mxu0 %v118_v20  ;;  %v818_v53 = vpack.c.bf16 %v167_v34, %v155_v27  ;;  %v178_v54 = vsub.f32 %v1020_v44, %v177_v35  ;;  %v868_v57 = vpack.c.bf16 %v171_v15, %v159_v14 }
  0x17   :  { %865 = vmatpush1.bf16.msra.mxu0 %v864_v21  ;;  %v820_v56 = vpack.c.bf16 %v173_v40, %v161_v39  ;;  %v190_v58 = vsub.f32 %v1022_v45, %v189_v41  ;;  %v184_v62 = vsub.f32 %v1029_v48, %v183_v46  ;;  %v870_v2 = vpack.c.bf16 %v189_v41, %v177_v35 }
  0x18   :  { %121 = vmatmul.mubr.f32.vlgmr.msra.gmra.mrb[0].mxu1 %v120_v52  ;;  %867 = vmatprep.subr.bf16.mxu0 %v866_v29  ;;  %v179_v0 = vand.u32 4294901760, %v178_v54  ;;  %v196_v4 = vsub.f32 %v1031_v49, %v195_v55  ;;  %v201_v5 = vand.u32 4294901760, %v1037_v51  ;;  %v213_v8 = vand.u32 4294901760, %v1046_v59 }
  0x19   :  { %817 = vmatpush1.bf16.msra.mxu1 %v816_v33  ;;  %v191_v6 = vand.u32 4294901760, %v190_v58  ;;  %v185_v7 = vand.u32 4294901760, %v184_v62  ;;  %v207_v10 = vand.u32 4294901760, %v1050_v61  ;;  %271 = vmatprep.mubr.f32.mxu1 %v913_v3  ;;  %v219_v13 = vand.u32 4294901760, %v1053_v63  ;;  %v786_v62 = vld [vmem:[%s1201_s2 + $0x30] sm:$0xff] }
  0x1a   :  { %819 = vmatprep.subr.bf16.mxu1 %v818_v53  ;;  %v197_v11 = vand.u32 4294901760, %v196_v4  ;;  %v202_v12 = vsub.f32 %v1037_v51, %v201_v5  ;;  %586 = vmatprep.mubr.f32.mxu0 %v913_v3  ;;  %v872_v15 = vpack.c.bf16 %v195_v55, %v183_v46  ;;  %v214_v19 = vsub.f32 %v1046_v59, %v213_v8 }
  0x1b   :  { %869 = vmatpush1.bf16.msra.mxu0 %v868_v57  ;;  %v822_v14 = vpack.c.bf16 %v191_v6, %v179_v0  ;;  %v208_v20 = vsub.f32 %v1050_v61, %v207_v10  ;;  %v874_v26 = vpack.c.bf16 %v213_v8, %v201_v5  ;;  %v220_v27 = vsub.f32 %v1053_v63, %v219_v13  ;;  %v787_v0 = vld [vmem:[%s1201_s2 + $0x38] sm:$0xff]  ;;  %v789_v8 = vld [vmem:[%s1201_s2 + $0x48] sm:$0xff] }
  0x1c   :  { %871 = vmatprep.subr.bf16.mxu0 %v870_v2  ;;  %v203_v21 = vand.u32 4294901760, %v202_v12  ;;  %v824_v29 = vpack.c.bf16 %v197_v11, %v185_v7  ;;  %v215_v30 = vand.u32 4294901760, %v214_v19  ;;  %v876_v34 = vpack.c.bf16 %v219_v13, %v207_v10  ;;  %v788_v7 = vld [vmem:[%s1201_s2 + $0x40] sm:$0xff]  ;;  %v790_v12 = vld [vmem:[%s1201_s2 + $0x50] sm:$0xff]  ;;  %v791_v13 = vld [vmem:[%s1201_s2 + $0x58] sm:$0xff] }
  0x1d   :  { %821 = vmatpush1.bf16.msra.mxu1 %v820_v56  ;;  %v209_v31 = vand.u32 4294901760, %v208_v20  ;;  %v221_v32 = vand.u32 4294901760, %v220_v27  ;;  %v830_v39 = vpack.c.bf16 %v971_v18, %v969_v17  ;;  %v832_v40 = vpack.c.bf16 %v986_v24, %v984_v23 }
  0x1e   :  { %823 = vmatprep.subr.bf16.mxu1 %v822_v14  ;;  %v826_v33 = vpack.c.bf16 %v215_v30, %v203_v21  ;;  %v834_v41 = vpack.c.bf16 %v1003_v36, %v998_v28  ;;  %v838_v17 = vpack.c.bf16 %v1022_v45, %v1020_v44  ;;  %v840_v18 = vpack.c.bf16 %v1031_v49, %v1029_v48  ;;  %v782_v45 = vld [vmem:[%s1201_s2 + $0x10] sm:$0xff]  ;;  %v683_v48 = vld [vmem:[%s1201_s2 + $0x8] sm:$0xff]  ;;  %v783_v49 = vld [vmem:[%s1201_s2 + $0x18] sm:$0xff] }
  0x1f   :  { %873 = vmatpush1.bf16.msra.mxu0 %v872_v15  ;;  %v828_v35 = vpack.c.bf16 %v221_v32, %v209_v31  ;;  %v792_v21 = vld [vmem:[%s1201_s2 + $0x60] sm:$0xff] }
  0x20   :  { %875 = vmatprep.subr.bf16.mxu0 %v874_v26  ;;  %v793_v26 = vld [vmem:[%s1201_s2 + $0x68] sm:$0xff] }
  0x21   :  { %825 = vmatpush1.bf16.msra.mxu1 %v824_v29 }
  0x22   :  { %827 = vmatprep.subr.bf16.mxu1 %v826_v33 }
  0x23   :  { %877 = vmatpush1.bf16.msra.mxu0 %v876_v34 }
  0x24   :  { %879 = vmatprep.subr.bf16.mxu0 %v967_v16  ;;  %v836_v16 = vpack.c.bf16 %v1016_v42, %v1008_v38  ;;  %v688_v38 = vlaneseq }
  0x25   :  { %829 = vmatpush1.bf16.msra.mxu1 %v828_v35 }
  0x26   :  { %831 = vmatprep.subr.bf16.mxu1 %v830_v39  ;;  %588 = vmatmul.mubr.f32.vlgmr.msra.gmra.mrb[0].mxu0 %v1056_v1  ;;  %v689_v42 = vand.u32 127, %v688_v38 }
  0x27   :  { %881 = vmatpush1.bf16.msra.mxu0 %v982_v22  ;;  %674 = vmatprep.mubr.f32.mxu0 %v913_v3  ;;  %v842_v22 = vpack.c.bf16 %v1046_v59, %v1037_v51  ;;  %v784_v59 = vld [vmem:[%s1201_s2 + $0x20] sm:$0xff] }
  0x28   :  { %273 = vmatmul.mubr.f32.vlgmr.msra.gmra.mrb[0].mxu1 %v1056_v1  ;;  %883 = vmatprep.subr.bf16.mxu0 %v988_v25  ;;  %vm709_vm1 = vcmp.lt.s32.totalorder %v689_v42, 127  ;;  %vm690_vm2 = vcmp.lt.s32.totalorder %v689_v42, 1  ;;  %vm728_vm3 = vcmp.lt.s32.totalorder %v689_v42, 16  ;;  %vm747_vm4 = vcmp.lt.s32.totalorder %v689_v42, 112 }
  0x29   :  { %833 = vmatpush1.bf16.msra.mxu1 %v832_v40  ;;  %375 = vmatprep.mubr.f32.mxu1 %v913_v3  ;;  %v844_v3 = vpack.c.bf16 %v1053_v63, %v1050_v61 }
  0x2a   :  { %835 = vmatprep.subr.bf16.mxu1 %v834_v41  ;;  %v794_v41 = vld [vmem:[%s1201_s2 + $0x70] sm:$0xff] }
  0x2b   :  { %885 = vmatpush1.bf16.msra.mxu0 %v1006_v37 }
  0x2c   :  { %887 = vmatprep.subr.bf16.mxu0 %v1018_v43 }
  0x2d   :  { %837 = vmatpush1.bf16.msra.mxu1 %v836_v16  ;;  %v795_v16 = vld [vmem:[%s1201_s2 + $0x78] sm:$0xff] }
  0x2e   :  { %839 = vmatprep.subr.bf16.mxu1 %v838_v17 }
  0x2f   :  { %889 = vmatpush1.bf16.msra.mxu0 %v1027_v47  ;;  %v682_v47 = vld [vmem:[%s1201_s2] sm:$0xff] }
  0x30   :  { %891 = vmatprep.subr.bf16.mxu0 %v1033_v50 }
  0x31   :  { %841 = vmatpush1.bf16.msra.mxu1 %v840_v18 }
  0x32   :  { %843 = vmatprep.subr.bf16.mxu1 %v842_v22 }
  0x33   :  { %893 = vmatpush1.bf16.msra.mxu0 %v1048_v60  ;;  %v785_v60 = vld [vmem:[%s1201_s2 + $0x28] sm:$0xff] }
  0x35   :  { %845 = vmatpush1.bf16.msra.mxu1 %v844_v3 }
  0x36   :  { %676 = vmatmul.mubr.f32.vlgmr.msra.gmra.mrb[0].mxu0 %v1056_v1 }
  0x38   :  { %378 = vmatmul.mubr.f32.vlgmr.msra.gmra.mrb[0].mxu1 %v1066_v9 }
 0x109   :  { %v677_v23 = vpop.f32.mrb[0].mxu0 }
 0x10a   :  { %v679_v24 = vpop.f32.mrb[1].mxu0 }
 0x10b   :  { %v379_v25 = vpop.f32.mrb[0].mxu1 }
 0x10c   :  { %v1127_v28 = vadd.f32 %v677_v23, %v379_v25  ;;  %v381_v36 = vpop.f32.mrb[1].mxu1 }
 0x10d   :  { %v1129_v37 = vadd.f32 %v679_v24, %v381_v36 }
 0x10e   :  { %705 = vrot.lane.b32.xlu1 %v1127_v28, %s914_s0  ;;  %684 = vrot.lane.b32.xlu0 %v1127_v28, %s915_s1  ;;  %v698_v46 = vmul.f32 %v1127_v28, %v782_v45 }
 0x10f   :  { %v699_v54 = vmul.f32 %v1129_v37, %v783_v49  ;;  %v797_v49 = vld [vmem:[%s1201_s2 + $0x88] sm:$0xff] }
 0x112   :  { %707 = vrot.lane.b32.xlu1 %v1129_v37, %s914_s0  ;;  %686 = vrot.lane.b32.xlu0 %v1129_v37, %s915_s1 }
 0x180   :  { %v706_v43 = vpop.permute.xlu1 %705  ;;  %v685_v44 = vpop.permute.xlu0 %684 }
 0x184   :  { %v708_v50 = vpop.permute.xlu1 %707  ;;  %v687_v51 = vpop.permute.xlu0 %686 }
 0x185   :  { %v710_v61 = vsel %vm709_vm1, %v706_v43, %v708_v50  ;;  %v711_v63 = vsel %vm709_vm1, %v708_v50, %v706_v43  ;;  %v691_v1 = vsel %vm690_vm2, %v685_v44, %v687_v51  ;;  %v692_v9 = vsel %vm690_vm2, %v687_v51, %v685_v44 }
 0x186   :  { %v693_v52 = vmul.f32 %v692_v9, %v682_v47  ;;  %v694_v53 = vmul.f32 %v691_v1, %v683_v48  ;;  %v712_v55 = vmul.f32 %v784_v59, %v710_v61  ;;  %v713_v56 = vmul.f32 %v785_v60, %v711_v63  ;;  %v796_v47 = vld [vmem:[%s1201_s2 + $0x80] sm:$0xff] }
 0x188   :  { %v700_v57 = vadd.f32 %v698_v46, %v693_v52  ;;  %v701_v58 = vadd.f32 %v699_v54, %v694_v53 }
 0x18a   :  { %v714_v2 = vadd.f32 %v712_v55, %v700_v57  ;;  %v715_v4 = vadd.f32 %v713_v56, %v701_v58 }
 0x18c   :  { %v719_v5 = vadd.f32 %v786_v62, %v714_v2  ;;  %v720_v6 = vadd.f32 %v787_v0, %v715_v4 }
 0x18e   :  { %724 = vrot.lane.b32.xlu0 %v719_v5, %s916_s8  ;;  %726 = vrot.lane.b32.xlu1 %v720_v6, %s916_s8  ;;  %v736_v27 = vmul.f32 %v790_v12, %v719_v5  ;;  %v737_v29 = vmul.f32 %v791_v13, %v720_v6 }
 0x192   :  { %743 = vrot.lane.b32.xlu0 %v719_v5, %s917_s9  ;;  %745 = vrot.lane.b32.xlu1 %v720_v6, %s917_s9 }
 0x200   :  { %v725_v10 = vpop.permute.xlu0 %724  ;;  %v727_v11 = vpop.permute.xlu1 %726 }
 0x201   :  { %v729_v14 = vsel %vm728_vm3, %v725_v10, %v727_v11  ;;  %v730_v15 = vsel %vm728_vm3, %v727_v11, %v725_v10 }
 0x202   :  { %v731_v19 = vmul.f32 %v788_v7, %v730_v15  ;;  %v732_v20 = vmul.f32 %v789_v8, %v729_v14 }
 0x204   :  { %v744_v30 = vpop.permute.xlu0 %743  ;;  %v746_v31 = vpop.permute.xlu1 %745  ;;  %v738_v34 = vadd.f32 %v736_v27, %v731_v19  ;;  %v739_v35 = vadd.f32 %v737_v29, %v732_v20 }
 0x205   :  { %v748_v32 = vsel %vm747_vm4, %v744_v30, %v746_v31  ;;  %v749_v33 = vsel %vm747_vm4, %v746_v31, %v744_v30 }
 0x206   :  { %v750_v39 = vmul.f32 %v792_v21, %v748_v32  ;;  %v751_v40 = vmul.f32 %v793_v26, %v749_v33 }
 0x208   :  { %v752_v17 = vadd.f32 %v750_v39, %v738_v34  ;;  %v753_v18 = vadd.f32 %v751_v40, %v739_v35 }
 0x20a   :  { %v757_v22 = vadd.f32 %v794_v41, %v752_v17  ;;  %v758_v3 = vadd.f32 %v795_v16, %v753_v18 }
 0x20c   :  { %v761_v23 = vmul.f32 0.70710677, %v757_v22  ;;  %v762_v24 = vmul.f32 0.70710677, %v758_v3  ;;  %v759_v38 = vmul.f32 0.5, %v757_v22  ;;  %v760_v43 = vmul.f32 0.5, %v758_v3 }
 0x20e   :  { %909 = verf.f32 %v761_v23 }
 0x20f   :  { %911 = verf.f32 %v762_v24 }
 0x218   :  { %v910_v25 = vpop.eup %909 }
 0x219   :  { %v912_v36 = vpop.eup %911  ;;  %v765_v42 = vadd.f32 1.0, %v910_v25 }
 0x21a   :  { %v766_v44 = vadd.f32 1.0, %v912_v36 }
 0x21b   :  { %v767_v45 = vmul.f32 %v765_v42, %v759_v38 }
 0x21c   :  { %v768_v48 = vmul.f32 %v766_v44, %v760_v43 }
 0x21d   :  { %v769_v50 = vmul.f32 %v1127_v28, %v767_v45 }
 0x21e   :  { %v770_v51 = vmul.f32 %v1129_v37, %v768_v48 }
 0x21f   :  { %v774_v59 = vmul.f32 %v796_v47, %v769_v50 }
 0x220   :  { %v775_v60 = vmul.f32 %v797_v49, %v770_v51 }
 0x221   :  { %776 = vst [vmem:[%s1202_s3] sm:$0xff] %v774_v59 }
 0x222   :  { %777 = vst [vmem:[%s1202_s3 + $0x8] sm:$0xff] %v775_v60 }

</bundles_post_ra>
